<compile_context>
chip_gen: v7x
topology: tpu7x:2x2x1
jax: 0.10.0
libtpu: 0.0.40
codegen_flags: <defaults>
</compile_context>

<pallas_src>
from functools import partial

import jax
import jax.numpy as jnp
from jax.experimental import pallas as pl
from jax.experimental.pallas import tpu as pltpu

_LANE = 128
_MiB = 1024 * 1024


def _round_up(x, m):
    return ((x + m - 1) // m) * m


def _cdiv(a, b):
    return -(-a // b)


def _largest_divisor_leq(n, cap):
    cap = max(1, min(n, cap))
    for d in range(cap, 0, -1):
        if n % d == 0:
            return d
    return 1


def _chip_config():
    """Generation-aware budgets.  block_budget = total per-block VMEM footprint
    (double-buffered in+out tiles + f32 compute temps)."""
    vmem_phys = None
    try:
        info = pltpu.get_tpu_info()
        vmem_phys = int(getattr(info, "vmem_capacity_bytes", 0)) or None
    except Exception:
        vmem_phys = None

    if vmem_phys is not None and vmem_phys <= 64 * _MiB:
        # v7x-class: 64 MiB VMEM per TensorCore, 2 TensorCores per chip.
        return {"block_budget": 24 * _MiB, "vmem_limit": 40 * _MiB, "multi_core": True}
    if vmem_phys is not None:
        # v5e / v6e: 128 MiB VMEM, single TensorCore.
        return {"block_budget": 40 * _MiB, "vmem_limit": 72 * _MiB, "multi_core": False}
    # Unknown chip: conservative settings that are safe everywhere.
    return {"block_budget": 20 * _MiB, "vmem_limit": 40 * _MiB, "multi_core": False}


def _ln2d_kernel(x_ref, w_ref, b_ref, o_ref, *, eps, inv_c):
    # x_ref: (Nb, C, TW) or (Nb, C, TS, 128); channel axis is always axis 1.
    # w_ref / b_ref: (1, C, 1) or (1, C, 1, 1) -> broadcast directly.
    x = x_ref[...].astype(jnp.float32)
    # One-pass statistics (f32 accumulation).
    u = jnp.sum(x, axis=1, keepdims=True) * inv_c            # E[x]
    ex2 = jnp.sum(x * x, axis=1, keepdims=True) * inv_c      # E[x^2]
    var = jnp.maximum(ex2 - u * u, 0.0)                      # biased variance
    inv = jax.lax.rsqrt(var + eps)
    w = w_ref[...].astype(jnp.float32)
    b = b_ref[...].astype(jnp.float32)
    scale = inv * w                                           # fold weight into scale
    o_ref[...] = ((x - u) * scale + b).astype(o_ref.dtype)


def layernorm2d(x, weight, bias, eps=1e-6):
    """x: (N, C, H, W); weight/bias: (C,). Normalizes over the channel dim."""
    N, C, H, W = x.shape
    HW = H * W
    cfg = _chip_config()
    itemsize = jnp.dtype(x.dtype).itemsize
    # Per-element VMEM cost: double-buffered in + out tiles in the input dtype
    # plus ~3 block-sized f32 compute temporaries.
    per_elem = 4 * itemsize + 12
    e_max = max(8 * _LANE, cfg["block_budget"] // per_elem)

    cost = pl.CostEstimate(
        flops=8 * N * C * HW,
        transcendentals=N * HW,                     # one rsqrt per spatial position
        bytes_accessed=2 * N * C * HW * itemsize,   # exact: no padding passes
    )
    cparams = pltpu.CompilerParams(
        dimension_semantics=("parallel", "parallel"),
        vmem_limit_bytes=cfg["vmem_limit"],
    )
    kernel = partial(_ln2d_kernel, eps=eps, inv_c=1.0 / C)

    if HW % _LANE == 0:
        # ---- 4-D lane-dense path: channel reduction over a non-minor axis ----
        S = HW // _LANE
        ts_cap = max(8, (e_max // max(C * _LANE, 1)) // 8 * 8)
        TS = S if S <= 8 else min(_round_up(S, 8), ts_cap)
        n_sp = _cdiv(S, TS)
        budget_imgs = max(1, e_max // (C * TS * _LANE))
        Nb = _largest_divisor_leq(N, budget_imgs)
        if cfg["multi_core"] and (N // Nb) * n_sp < 2 and N > 1:
            Nb = _largest_divisor_leq(N, max(1, N // 2))   # give both TCs work

        x4 = x.reshape(N, C, S, _LANE)                     # contiguous split: free
        w4 = weight.reshape(1, C, 1, 1)
        b4 = bias.reshape(1, C, 1, 1)

        out = pl.pallas_call(
            kernel,
            out_shape=jax.ShapeDtypeStruct((N, C, S, _LANE), x.dtype),
            grid_spec=pltpu.PrefetchScalarGridSpec(
                num_scalar_prefetch=0,
                grid=(N // Nb, n_sp),
                in_specs=[
                    pl.BlockSpec((Nb, C, TS, _LANE), lambda n, j: (n, 0, j, 0)),
                    pl.BlockSpec((1, C, 1, 1), lambda n, j: (0, 0, 0, 0)),
                    pl.BlockSpec((1, C, 1, 1), lambda n, j: (0, 0, 0, 0)),
                ],
                out_specs=pl.BlockSpec((Nb, C, TS, _LANE), lambda n, j: (n, 0, j, 0)),
            ),
            compiler_params=cparams,
            cost_estimate=cost,
        )(x4, w4, b4)
        return out.reshape(N, C, H, W)

    # ---- 3-D path (HW not a multiple of 128): masked partial lane block ----
    tw_cap = max(_LANE, (e_max // max(C, 1)) // _LANE * _LANE)
    TW = min(_round_up(HW, _LANE), tw_cap)
    n_sp = _cdiv(HW, TW)                                   # last block masked, no pad
    budget_imgs = max(1, e_max // (C * TW))
    Nb = _largest_divisor_leq(N, budget_imgs)
    if cfg["multi_core"] and (N // Nb) * n_sp < 2 and N > 1:
        Nb = _largest_divisor_leq(N, max(1, N // 2))

    x3 = x.reshape(N, C, HW)                               # contiguous merge: free
    w3 = weight.reshape(1, C, 1)
    b3 = bias.reshape(1, C, 1)

    out = pl.pallas_call(
        kernel,
        out_shape=jax.ShapeDtypeStruct((N, C, HW), x.dtype),
        grid_spec=pltpu.PrefetchScalarGridSpec(
            num_scalar_prefetch=0,
            grid=(N // Nb, n_sp),
            in_specs=[
                pl.BlockSpec((Nb, C, TW), lambda n, j: (n, 0, j)),
                pl.BlockSpec((1, C, 1), lambda n, j: (0, 0, 0)),
                pl.BlockSpec((1, C, 1), lambda n, j: (0, 0, 0)),
            ],
            out_specs=pl.BlockSpec((Nb, C, TW), lambda n, j: (n, 0, j)),
        ),
        compiler_params=cparams,
        cost_estimate=cost,
    )(x3, w3, b3)
    return out.reshape(N, C, H, W)


def layernorm2d_ref(x, weight, bias, eps=1e-6):
    """Pure-JAX reference mirroring the PyTorch forward."""
    u = jnp.mean(x, axis=1, keepdims=True)
    s = jnp.mean((x - u) ** 2, axis=1, keepdims=True)
    xn = (x - u) / jnp.sqrt(s + eps)
    return weight[None, :, None, None] * xn + bias[None, :, None, None]


if __name__ == "__main__":
    key = jax.random.PRNGKey(0)

    # Primary small test (module's conv-style usage); exercises the 4-D path.
    N, C, H, W = 2, 4, 16, 16
    x = jax.random.normal(key, (N, C, H, W), dtype=jnp.float32)
    weight = jnp.ones((C,), dtype=jnp.float32) + 0.1 * jnp.arange(C, dtype=jnp.float32)
    bias = jnp.zeros((C,), dtype=jnp.float32) + 0.05 * jnp.arange(C, dtype=jnp.float32)

    y = jax.block_until_ready(layernorm2d(x, weight, bias))
    y_ref = layernorm2d_ref(x, weight, bias)
    assert y.shape == (N, C, H, W)
    assert jnp.allclose(y, y_ref, atol=1e-5, rtol=1e-5), "mismatch vs reference (4-D path)"

    # Secondary tiny test exercising the masked-partial-block 3-D path (HW % 128 != 0).
    N2, C2, H2, W2 = 3, 8, 5, 7
    x2 = jax.random.normal(jax.random.PRNGKey(1), (N2, C2, H2, W2), dtype=jnp.float32)
    w2 = 1.0 + 0.1 * jnp.arange(C2, dtype=jnp.float32)
    b2 = 0.05 * jnp.arange(C2, dtype=jnp.float32)
    y2 = jax.block_until_ready(layernorm2d(x2, w2, b2))
    assert jnp.allclose(y2, layernorm2d_ref(x2, w2, b2), atol=1e-5, rtol=1e-5), \
        "mismatch vs reference (3-D masked path)"

    print("KERNEL_OK")
</pallas_src>

<mosaic_0001>
module attributes {stable_mosaic.version = 11 : i64} {
  func.func @_ln2d_kernel(%arg0: i32, %arg1: i32, %arg2: memref<2x4x2x128xf32, #tpu.memory_space<vmem>>, %arg3: memref<1x4x1x1xf32, #tpu.memory_space<vmem>>, %arg4: memref<1x4x1x1xf32, #tpu.memory_space<vmem>>, %arg5: memref<2x4x2x128xf32, #tpu.memory_space<vmem>>) attributes {dimension_semantics = [#tpu.dimension_semantics<parallel>, #tpu.dimension_semantics<parallel>], iteration_bounds = array<i64: 1, 1>, scalar_prefetch = 0 : i64, scratch_operands = 0 : i64, tpu.core_type = #tpu.core_type<tc>, window_params = [{transform_indices = @transform_0, window_bounds = array<i64: 2, 4, 2, 128>}, {pipeline_mode = #tpu.pipeline_mode<synchronous>, transform_indices = @transform_1, window_bounds = array<i64: 1, 4, 1, 1>}, {pipeline_mode = #tpu.pipeline_mode<synchronous>, transform_indices = @transform_2, window_bounds = array<i64: 1, 4, 1, 1>}, {transform_indices = @transform_3, window_bounds = array<i64: 2, 4, 2, 128>}]} {
    %c0 = arith.constant 0 : index
    %c0_0 = arith.constant 0 : index
    %c0_1 = arith.constant 0 : index
    %c0_2 = arith.constant 0 : index
    %0 = vector.load %arg2[%c0, %c0_0, %c0_1, %c0_2] : memref<2x4x2x128xf32, #tpu.memory_space<vmem>>, vector<2x4x2x128xf32>
    %cst = arith.constant dense<0.000000e+00> : vector<2x2x128xf32>
    %1 = vector.multi_reduction <add>, %0, %cst [1] : vector<2x4x2x128xf32> to vector<2x2x128xf32>
    %2 = vector.shape_cast %1 : vector<2x2x128xf32> to vector<2x1x2x128xf32>
    %cst_3 = arith.constant 2.500000e-01 : f32
    %3 = vector.broadcast %cst_3 : f32 to vector<2x1x2x128xf32>
    %4 = arith.mulf %2, %3 : vector<2x1x2x128xf32>
    %5 = arith.mulf %0, %0 : vector<2x4x2x128xf32>
    %cst_4 = arith.constant dense<0.000000e+00> : vector<2x2x128xf32>
    %6 = vector.multi_reduction <add>, %5, %cst_4 [1] : vector<2x4x2x128xf32> to vector<2x2x128xf32>
    %7 = vector.shape_cast %6 : vector<2x2x128xf32> to vector<2x1x2x128xf32>
    %cst_5 = arith.constant 2.500000e-01 : f32
    %8 = vector.broadcast %cst_5 : f32 to vector<2x1x2x128xf32>
    %9 = arith.mulf %7, %8 : vector<2x1x2x128xf32>
    %10 = arith.mulf %4, %4 : vector<2x1x2x128xf32>
    %11 = arith.subf %9, %10 : vector<2x1x2x128xf32>
    %cst_6 = arith.constant 0.000000e+00 : f32
    %12 = vector.broadcast %cst_6 : f32 to vector<2x1x2x128xf32>
    %13 = arith.maximumf %11, %12 : vector<2x1x2x128xf32>
    %cst_7 = arith.constant 9.99999997E-7 : f32
    %14 = vector.broadcast %cst_7 : f32 to vector<2x1x2x128xf32>
    %15 = arith.addf %13, %14 : vector<2x1x2x128xf32>
    %16 = math.rsqrt %15 : vector<2x1x2x128xf32>
    %c0_8 = arith.constant 0 : index
    %c0_9 = arith.constant 0 : index
    %c0_10 = arith.constant 0 : index
    %c0_11 = arith.constant 0 : index
    %17 = vector.load %arg3[%c0_8, %c0_9, %c0_10, %c0_11] : memref<1x4x1x1xf32, #tpu.memory_space<vmem>>, vector<1x4x1x1xf32>
    %c0_12 = arith.constant 0 : index
    %c0_13 = arith.constant 0 : index
    %c0_14 = arith.constant 0 : index
    %c0_15 = arith.constant 0 : index
    %18 = vector.load %arg4[%c0_12, %c0_13, %c0_14, %c0_15] : memref<1x4x1x1xf32, #tpu.memory_space<vmem>>, vector<1x4x1x1xf32>
    %19 = vector.broadcast %16 : vector<2x1x2x128xf32> to vector<2x4x2x128xf32>
    %20 = vector.broadcast %17 : vector<1x4x1x1xf32> to vector<2x4x2x128xf32>
    %21 = arith.mulf %19, %20 : vector<2x4x2x128xf32>
    %22 = vector.broadcast %4 : vector<2x1x2x128xf32> to vector<2x4x2x128xf32>
    %23 = arith.subf %0, %22 : vector<2x4x2x128xf32>
    %24 = arith.mulf %23, %21 : vector<2x4x2x128xf32>
    %25 = vector.broadcast %18 : vector<1x4x1x1xf32> to vector<2x4x2x128xf32>
    %26 = arith.addf %24, %25 : vector<2x4x2x128xf32>
    %c0_16 = arith.constant 0 : index
    %c0_17 = arith.constant 0 : index
    %c0_18 = arith.constant 0 : index
    %c0_19 = arith.constant 0 : index
    %27 = vector.load %arg5[%c0_16, %c0_17, %c0_18, %c0_19] : memref<2x4x2x128xf32, #tpu.memory_space<vmem>>, vector<2x4x2x128xf32>
    tpu.vector_store %arg5[%c0_16, %c0_17, %c0_18, %c0_19], %26 {strides = array<i32>} : memref<2x4x2x128xf32, #tpu.memory_space<vmem>>, vector<2x4x2x128xf32>,
    return
  }
  func.func @transform_0(%arg0: i32, %arg1: i32) -> (i32, i32, i32, i32) {
    %c0_i32 = arith.constant 0 : i32
    %c0_i32_0 = arith.constant 0 : i32
    %c0_i32_1 = arith.constant 0 : i32
    return %arg0, %c0_i32, %arg1, %c0_i32_0 : i32, i32, i32, i32
  }
  func.func @transform_1(%arg0: i32, %arg1: i32) -> (i32, i32, i32, i32) {
    %c0_i32 = arith.constant 0 : i32
    %c0_i32_0 = arith.constant 0 : i32
    %c0_i32_1 = arith.constant 0 : i32
    %c0_i32_2 = arith.constant 0 : i32
    %c0_i32_3 = arith.constant 0 : i32
    return %c0_i32, %c0_i32_0, %c0_i32_1, %c0_i32_2 : i32, i32, i32, i32
  }
  func.func @transform_2(%arg0: i32, %arg1: i32) -> (i32, i32, i32, i32) {
    %c0_i32 = arith.constant 0 : i32
    %c0_i32_0 = arith.constant 0 : i32
    %c0_i32_1 = arith.constant 0 : i32
    %c0_i32_2 = arith.constant 0 : i32
    %c0_i32_3 = arith.constant 0 : i32
    return %c0_i32, %c0_i32_0, %c0_i32_1, %c0_i32_2 : i32, i32, i32, i32
  }
  func.func @transform_3(%arg0: i32, %arg1: i32) -> (i32, i32, i32, i32) {
    %c0_i32 = arith.constant 0 : i32
    %c0_i32_0 = arith.constant 0 : i32
    %c0_i32_1 = arith.constant 0 : i32
    return %arg0, %c0_i32, %arg1, %c0_i32_0 : i32, i32, i32, i32
  }
}

</mosaic_0001>

<bundles_post_ra>
// kernel: tpu_custom_call.1
= control target key start
LH: loop header
LB: loop body
LE: loop exit
PB: predicated region body
PF: predicated region fallthrough
CT: control target
= control target key end

     0   :  { %8 = vsyncpa [#allocation3], 0  ;;  %s435_s0 = inlined_call_operand.hbm [shape: f32[2,4,2,128], index: 0, kind: input, shape index: {}]   ;;  %s436_s1 = inlined_call_operand.vmem [shape: f32[1,4,1,1], index: 1, kind: input, shape index: {}]   ;;  %s437_s2 = inlined_call_operand.vmem [shape: f32[1,4,1,1], index: 2, kind: input, shape index: {}]   ;;  %s438_s3 = inlined_call_operand.hbm [shape: f32[2,4,2,128], index: 3, kind: output, shape index: {}]  }
   0x1   :  { %9 = vsyncpa [#allocation4], 0  ;;  %s292_s12 = smov [#allocation2]   ;;  %s244_s16 = scalar_lea.hbm %s435_s0, 256 }
   0x2   :  { %s15_s13 = sshll.u32 %s292_s12, 4  ;;  %p245_p0 = scmp.ne.s32.totalorder %s435_s0, %s244_s16  ;;  %s16_s13 = int_to_ptr.vmem [resolvable:$true] %s15_s13 }
   0x3   :  { %p248_p1 = scmp.lt.u32.totalorder %s244_s16, %s435_s0 }
   0x5   :  { %p250_p2 = pnand %p248_p1, %p245_p0 }
   0x7   :  { %253 = shalt.err (!%p250_p2)
}
   0x8   :  { %s254_s21 = scalar_lea.vmem %s16_s13, 256  ;;  %p259_p4 = scmp.lt.s32.totalorder %s16_s13, %s16_s13 }
   0x9   :  { %p255_p3 = scmp.ne.s32.totalorder %s16_s13, %s254_s21  ;;  %p260_p5 = scmp.lt.s32.totalorder %s254_s21, %s254_s21 }
   0xb   :  { %p261_p6 = por %p260_p5, %p259_p4 }
   0xd   :  { %p262_p7 = pnand %p261_p6, %p255_p3 }
   0xf   :  { %265 = shalt.err (!%p262_p7)
}
  0x10   :  { %s293_s22 = smov 32   ;;  %s294_s23 = smov 2  }
  0x11   :  { %21 = dma.hbm_to_vmem [thread:$0]  %s435_s0, 256, %s16_s13, [#allocation3], %s293_s22, %s293_s22, %s294_s23  }
  0x12   :  { %288 = dma.done.wait [#allocation3], 256  }
  0x13   :  { %289 = vsyncadd [#allocation3], 4294967040  ;;  %v295_v0 = vmov 0   ;;  %v227_v1 = vld [vmem:[%s436_s1 + $0x2] ss:$0 sm:$0xff]  ;;  %vm37_vm0 = vcmask 1041408  }
  0x14   :  { %239 = vset.pattern.permute.xlu1 %v295_v0  ;;  %238 = vset.pattern.permute.xlu0 %v295_v0  ;;  %v225_v2 = vld [vmem:[%s436_s1] ss:$0 sm:$0xff]  ;;  %v228_v3 = vld [vmem:[%s436_s1 + $0x3] ss:$0 sm:$0xff]  ;;  %v226_v4 = vld [vmem:[%s436_s1 + $0x1] ss:$0 sm:$0xff] }
  0x15   :  { %125 = vperm.xlu1 %239, %v227_v1   ;;  %117 = vperm.xlu0 %238, %v225_v2   ;;  %v230_v5 = vld [vmem:[%s437_s2 + $0x1] ss:$0 sm:$0xff]  ;;  %v229_v6 = vld [vmem:[%s437_s2] ss:$0 sm:$0xff]  ;;  %v232_v7 = vld [vmem:[%s437_s2 + $0x3] ss:$0 sm:$0xff] }
  0x16   :  { %v231_v8 = vld [vmem:[%s437_s2 + $0x2] ss:$0 sm:$0xff]  ;;  %v356_v9 = vld [vmem:[#allocation2] sm:$0x3]  ;;  %v360_v11 = vld [vmem:[#allocation2 + $0x8] sm:$0x3] }
  0x17   :  { %v358_v10 = vld [vmem:[#allocation2 + $0x2] sm:$0x3]  ;;  %v362_v12 = vld [vmem:[#allocation2 + $0xa] sm:$0x3]  ;;  %v364_v13 = vld [vmem:[#allocation2 + $0x4] sm:$0x3]  ;;  %v54_v16 = vmul.f32 %v356_v9, %v356_v9  ;;  %v58_v20 = vmul.f32 %v360_v11, %v360_v11 }
  0x18   :  { %v38_v14 = vsel %vm37_vm0, %v356_v9, 0.0  ;;  %v39_v15 = vsel %vm37_vm0, %v358_v10, 0.0  ;;  %v55_v17 = vmul.f32 %v358_v10, %v358_v10  ;;  %v45_v18 = vsel %vm37_vm0, %v360_v11, 0.0  ;;  %v382_v22 = vld [vmem:[#allocation2 + $0xc] sm:$0x3]  ;;  %s296_s1 = smov [#allocation5]  }
  0x19   :  { %129 = vperm.xlu1 %239, %v228_v3   ;;  %121 = vperm.xlu0 %238, %v226_v4   ;;  %v46_v19 = vsel %vm37_vm0, %v362_v12, 0.0  ;;  %v59_v21 = vmul.f32 %v362_v12, %v362_v12  ;;  %v40_v23 = vadd.f32 %v39_v15, %v38_v14  ;;  %v56_v24 = vmul.f32 %v364_v13, %v364_v13  ;;  %v386_v25 = vld [vmem:[#allocation2 + $0x6] sm:$0x3]  ;;  %v398_v34 = vld [vmem:[#allocation2 + $0xe] sm:$0x3]  ;;  %s213_s2 = sshll.u32 %s296_s1, 4  ;;  %s214_s2 = int_to_ptr.vmem [resolvable:$true] %s213_s2 }
  0x1a   :  { %v41_v26 = vsel %vm37_vm0, %v364_v13, 0.0  ;;  %v47_v27 = vadd.f32 %v46_v19, %v45_v18  ;;  %v62_v28 = vsel %vm37_vm0, %v54_v16, 0.0  ;;  %v63_v29 = vsel %vm37_vm0, %v55_v17, 0.0  ;;  %s266_s14 = scalar_lea.vmem %s214_s2, 256  ;;  %p271_p9 = scmp.lt.s32.totalorder %s214_s2, %s214_s2 }
  0x1b   :  { %v48_v30 = vsel %vm37_vm0, %v382_v22, 0.0  ;;  %v60_v31 = vmul.f32 %v382_v22, %v382_v22  ;;  %v69_v32 = vsel %vm37_vm0, %v58_v20, 0.0  ;;  %v70_v33 = vsel %vm37_vm0, %v59_v21, 0.0  ;;  %p267_p8 = scmp.ne.s32.totalorder %s214_s2, %s266_s14  ;;  %p272_p10 = scmp.lt.s32.totalorder %s266_s14, %s266_s14 }
  0x1c   :  { %v42_v35 = vadd.f32 %v41_v26, %v40_v23  ;;  %v57_v36 = vmul.f32 %v386_v25, %v386_v25  ;;  %v64_v37 = vadd.f32 %v63_v29, %v62_v28  ;;  %v43_v38 = vsel %vm37_vm0, %v386_v25, 0.0 }
  0x1d   :  { %181 = vperm.xlu1 %239, %v230_v5   ;;  %177 = vperm.xlu0 %238, %v229_v6   ;;  %v49_v39 = vadd.f32 %v48_v30, %v47_v27  ;;  %v65_v40 = vsel %vm37_vm0, %v56_v24, 0.0  ;;  %v71_v41 = vadd.f32 %v70_v33, %v69_v32  ;;  %v50_v42 = vsel %vm37_vm0, %v398_v34, 0.0  ;;  %p273_p11 = por %p272_p10, %p271_p9 }
  0x1e   :  { %v61_v43 = vmul.f32 %v398_v34, %v398_v34  ;;  %v72_v44 = vsel %vm37_vm0, %v60_v31, 0.0  ;;  %v44_v45 = vadd.f32 %v43_v38, %v42_v35  ;;  %v66_v46 = vadd.f32 %v65_v40, %v64_v37 }
  0x1f   :  { %v51_v47 = vadd.f32 %v50_v42, %v49_v39  ;;  %v67_v48 = vsel %vm37_vm0, %v57_v36, 0.0  ;;  %v73_v49 = vadd.f32 %v72_v44, %v71_v41  ;;  %p274_p12 = pnand %p273_p11, %p267_p8 }
  0x20   :  { %v74_v50 = vsel %vm37_vm0, %v61_v43, 0.0  ;;  %v52_v51 = vmul.f32 0.25, %v44_v45  ;;  %v68_v52 = vadd.f32 %v67_v48, %v66_v46 }
  0x21   :  { %189 = vperm.xlu1 %239, %v232_v7   ;;  %185 = vperm.xlu0 %238, %v231_v8   ;;  %v53_v53 = vmul.f32 0.25, %v51_v47  ;;  %v75_v54 = vadd.f32 %v74_v50, %v73_v49 }
  0x22   :  { %v76_v55 = vmul.f32 0.25, %v68_v52  ;;  %v78_v56 = vmul.f32 %v52_v51, %v52_v51  ;;  %v140_v7 = vsub.f32 %v356_v9, %v52_v51  ;;  %v141_v14 = vsub.f32 %v358_v10, %v52_v51 }
  0x23   :  { %v77_v57 = vmul.f32 0.25, %v75_v54  ;;  %v79_v58 = vmul.f32 %v53_v53, %v53_v53  ;;  %v144_v8 = vsub.f32 %v360_v11, %v53_v53  ;;  %v145_v15 = vsub.f32 %v362_v12, %v53_v53 }
  0x24   :  { %v80_v59 = vsub.f32 %v76_v55, %v78_v56  ;;  %v143_v18 = vsub.f32 %v386_v25, %v52_v51  ;;  %v147_v19 = vsub.f32 %v398_v34, %v53_v53  ;;  %v142_v23 = vsub.f32 %v364_v13, %v52_v51 }
  0x25   :  { %v81_v60 = vsub.f32 %v77_v57, %v79_v58  ;;  %v146_v24 = vsub.f32 %v382_v22, %v53_v53 }
  0x26   :  { %v82_v61 = vmax.f32 %v80_v59, 0.0 }
  0x27   :  { %v83_v62 = vmax.f32 %v81_v60, 0.0 }
  0x28   :  { %v84_v63 = vadd.f32 1e-06, %v82_v61 }
  0x29   :  { %v85_v0 = vadd.f32 1e-06, %v83_v62 }
  0x2a   :  { %240 = vrsqrt.f32 %v84_v63 }
  0x2b   :  { %242 = vrsqrt.f32 %v85_v0 }
  0x34   :  { %v241_v1 = vpop.eup %240 }
  0x35   :  { %v243_v2 = vpop.eup %242 }
  0x94   :  { %v126_v3 = vpop.permute.xlu1 %125  ;;  %v118_v4 = vpop.permute.xlu0 %117 }
  0x95   :  { %v132_v5 = vmul.f32 %v241_v1, %v118_v4  ;;  %v136_v6 = vmul.f32 %v243_v2, %v118_v4  ;;  %v134_v26 = vmul.f32 %v241_v1, %v126_v3  ;;  %v138_v9 = vmul.f32 %v243_v2, %v126_v3 }
  0x97   :  { %v148_v27 = vmul.f32 %v140_v7, %v132_v5  ;;  %v152_v11 = vmul.f32 %v144_v8, %v136_v6  ;;  %v150_v35 = vmul.f32 %v142_v23, %v134_v26  ;;  %v154_v36 = vmul.f32 %v146_v24, %v138_v9 }
  0x98   :  { %v130_v16 = vpop.permute.xlu1 %129  ;;  %v122_v17 = vpop.permute.xlu0 %121 }
  0x99   :  { %v133_v20 = vmul.f32 %v241_v1, %v122_v17  ;;  %v137_v21 = vmul.f32 %v243_v2, %v122_v17  ;;  %v135_v28 = vmul.f32 %v241_v1, %v130_v16  ;;  %v139_v10 = vmul.f32 %v243_v2, %v130_v16 }
  0x9b   :  { %v149_v29 = vmul.f32 %v141_v14, %v133_v20  ;;  %v153_v12 = vmul.f32 %v145_v15, %v137_v21  ;;  %v151_v13 = vmul.f32 %v143_v18, %v135_v28  ;;  %v155_v22 = vmul.f32 %v147_v19, %v139_v10 }
  0x9c   :  { %v182_v30 = vpop.permute.xlu1 %181  ;;  %v178_v31 = vpop.permute.xlu0 %177 }
  0x9d   :  { %v193_v32 = vadd.f32 %v182_v30, %v149_v29  ;;  %v197_v25 = vadd.f32 %v182_v30, %v153_v12  ;;  %v192_v33 = vadd.f32 %v178_v31, %v148_v27  ;;  %v196_v34 = vadd.f32 %v178_v31, %v152_v11 }
  0x9f   :  { %201 = vst [vmem:[#allocation5 + $0x2] sm:$0x3] %v193_v32  ;;  %205 = vst [vmem:[#allocation5 + $0xa] sm:$0x3] %v197_v25 }
  0xa0   :  { %200 = vst [vmem:[#allocation5] sm:$0x3] %v192_v33  ;;  %204 = vst [vmem:[#allocation5 + $0x8] sm:$0x3] %v196_v34  ;;  %v190_v37 = vpop.permute.xlu1 %189  ;;  %v186_v38 = vpop.permute.xlu0 %185 }
  0xa1   :  { %v195_v39 = vadd.f32 %v190_v37, %v151_v13  ;;  %v199_v40 = vadd.f32 %v190_v37, %v155_v22  ;;  %v194_v41 = vadd.f32 %v186_v38, %v150_v35  ;;  %v198_v42 = vadd.f32 %v186_v38, %v154_v36 }
  0xa3   :  { %203 = vst [vmem:[#allocation5 + $0x6] sm:$0x3] %v195_v39  ;;  %207 = vst [vmem:[#allocation5 + $0xe] sm:$0x3] %v199_v40 }
  0xa4   :  { %202 = vst [vmem:[#allocation5 + $0x4] sm:$0x3] %v194_v41  ;;  %206 = vst [vmem:[#allocation5 + $0xc] sm:$0x3] %v198_v42 }
  0xa5   :  { %277 = shalt.err (!%p274_p12)
}
  0xa6   :  { %s278_s17 = scalar_lea.hbm %s438_s3, 256 }
  0xa7   :  { %p279_p13 = scmp.ne.s32.totalorder %s438_s3, %s278_s17  ;;  %p282_p0 = scmp.lt.u32.totalorder %s278_s17, %s438_s3 }
  0xa9   :  { %p284_p1 = pnand %p282_p0, %p279_p13 }
  0xab   :  { %287 = shalt.err (!%p284_p1)
}
  0xac   :  { %219 = dma.vmem_to_hbm [thread:$0]  %s214_s2, 256, %s438_s3, [#allocation4], %s293_s22, %s293_s22, %s294_s23  }
  0xad   :  { %290 = dma.done.wait [#allocation4], 256  }
  0xae   :  { %291 = vsyncadd [#allocation4], 4294967040 }
  0xaf   :  { %223 = vsyncpa [#allocation3], 1 }
  0xb0   :  { %224 = vsyncpa [#allocation4], 1 }

</bundles_post_ra>
